<compile_context>
chip_gen: v6e
topology: v6e:2x2x1
jax: 0.10.0
libtpu: 0.0.40
codegen_flags: <defaults>
</compile_context>

<pallas_src>
import math

import jax
import jax.numpy as jnp
from jax.experimental import pallas as pl
from jax.experimental.pallas import tpu as pltpu


def _round_up(x, m):
    return ((x + m - 1) // m) * m


# ---------------------------------------------------------------------------
# Kernels
# ---------------------------------------------------------------------------
def _gcn_layer1_kernel(adj_ref, xk_ref, xi_ref, w1_ref, b1_ref, h_ref, acc_ref):
    """h_rowtile = relu(((adj @ x) + 0.2*x)_rowtile @ W1p + b1p), k-tiled over nodes."""
    k = pl.program_id(1)

    @pl.when(k == 0)
    def _():
        # Seed accumulator with the 0.2*support residual pulled in front of W1.
        acc_ref[...] = 0.2 * xi_ref[...].astype(jnp.float32)

    acc_ref[...] += jnp.dot(adj_ref[...], xk_ref[...],
                            preferred_element_type=jnp.float32)

    @pl.when(k == pl.num_programs(1) - 1)
    def _():
        t = acc_ref[...].astype(w1_ref.dtype)
        h = jnp.dot(t, w1_ref[...], preferred_element_type=jnp.float32)
        h = h + b1_ref[...]                       # f32 bias add + ReLU (v5e-safe)
        h_ref[...] = jnp.maximum(h, 0.0).astype(h_ref.dtype)


def _gcn_layer2_kernel(adj_ref, hk_ref, hi_ref, w2_ref, b2_ref, mask_ref,
                       o_ref, acc_ref):
    """out_rowtile = log_softmax(((adj @ h) + 0.2*h)_rowtile @ W2p + b2p)."""
    k = pl.program_id(1)

    @pl.when(k == 0)
    def _():
        acc_ref[...] = 0.2 * hi_ref[...].astype(jnp.float32)

    acc_ref[...] += jnp.dot(adj_ref[...], hk_ref[...],
                            preferred_element_type=jnp.float32)

    @pl.when(k == pl.num_programs(1) - 1)
    def _():
        s = acc_ref[...].astype(w2_ref.dtype)
        out = jnp.dot(s, w2_ref[...], preferred_element_type=jnp.float32)
        out = out + b2_ref[...]
        # Lane-padded class axis: one (1, cpad) additive mask (0 / -1e30) drops
        # padded lanes from the max and (via exp underflow to 0) the normalizer;
        # padded output lanes are sliced away in the wrapper.
        logits = out + mask_ref[...]
        m = jnp.max(logits, axis=1, keepdims=True)
        z = logits - m
        lse = jnp.log(jnp.sum(jnp.exp(z), axis=1, keepdims=True))
        o_ref[...] = (z - lse).astype(o_ref.dtype)


# ---------------------------------------------------------------------------
# Wrapper
# ---------------------------------------------------------------------------
def _compiler_params(est_bytes):
    """Raise scoped VMEM only when the double-buffered estimate needs it."""
    vmem_limit = None
    if est_bytes > (12 << 20):                      # v5e scoped default is 16 MiB
        vmem_limit = min(int(1.25 * est_bytes), 44 << 20)  # headroom on v7x (64 MiB)
    return pltpu.CompilerParams(
        dimension_semantics=("parallel", "arbitrary"),
        vmem_limit_bytes=vmem_limit,
    )


def _pick_tiles(n, tile_rows, tile_k):
    """bf16 packed tile is (16, 128): sublane-aligned rows, lane-aligned k."""
    tm = min(tile_rows, n)
    if n // tm < 2 and n >= 32:                     # >=2 row tiles: megacore + pipeline
        tm = _round_up(n // 2, 16)
    while tm > 16 and n % tm != 0:
        tm -= 16
    tm = max(tm, 16)
    assert n % tm == 0 and tm % 16 == 0

    tk = min(tile_k, n)
    if tk != n:
        tk = max(128, (tk // 128) * 128)
        while tk > 128 and n % tk != 0:
            tk -= 128
        assert n % tk == 0 and tk % 128 == 0
    return tm, tk


def gcn_forward(x, adj, w1, b1, w2, b2, *, tile_rows=256, tile_k=512,
                compute_dtype=jnp.bfloat16):
    """Two-phase, (rows, k)-tiled GCN forward. bf16 matmul operands, f32 accumulation."""
    n, nfeat = x.shape
    nhid = w1.shape[1]
    nclass = w2.shape[1]
    assert adj.shape == (n, n)
    assert n % 16 == 0, "node count must be sublane-pack (16) aligned for bf16"

    hpad = _round_up(nhid, 128)     # lane-dense hidden axis -> unmasked stores of h
    cpad = _round_up(nclass, 128)   # lane-dense class axis  -> unmasked stores of out

    tm, tk = _pick_tiles(n, tile_rows, tile_k)
    grid = (n // tm, n // tk)

    # adj streamed untouched (no host-side eye/add pass); residual added in-kernel.
    adj_c = adj.astype(compute_dtype)
    x_c = x.astype(compute_dtype)
    w1_p = jnp.zeros((nfeat, hpad), compute_dtype).at[:, :nhid].set(
        w1.astype(compute_dtype))
    b1_p = jnp.zeros((1, hpad), jnp.float32).at[:, :nhid].set(
        jnp.asarray(b1, jnp.float32).reshape(1, nhid))
    w2_p = jnp.zeros((hpad, cpad), compute_dtype).at[:nhid, :nclass].set(
        w2.astype(compute_dtype))
    b2_p = jnp.zeros((1, cpad), jnp.float32).at[:, :nclass].set(
        jnp.asarray(b2, jnp.float32).reshape(1, nclass))
    mask_p = jnp.full((1, cpad), -1e30, jnp.float32).at[:, :nclass].set(0.0)

    isz = jnp.dtype(compute_dtype).itemsize

    def full(shape):
        return pl.BlockSpec(shape, lambda i, k: (0,) * len(shape))

    # ---- Phase 1: h = relu(((adj @ x) + 0.2*x) @ W1p + b1p) ----
    est1 = (2 * (tm * tk + tk * nfeat + tm * nfeat) * isz   # streamed inputs, x2 buffers
            + 2 * (nfeat * hpad * isz + hpad * 4)           # resident params
            + 2 * tm * hpad * isz                           # output, x2 buffers
            + tm * nfeat * 4)                               # f32 accumulator scratch
    h = pl.pallas_call(
        _gcn_layer1_kernel,
        out_shape=jax.ShapeDtypeStruct((n, hpad), compute_dtype),
        grid=grid,
        in_specs=[
            pl.BlockSpec((tm, tk), lambda i, k: (i, k)),       # adj (streamed)
            pl.BlockSpec((tk, nfeat), lambda i, k: (k, 0)),    # x, contraction tile
            pl.BlockSpec((tm, nfeat), lambda i, k: (i, 0)),    # x, residual row tile
            full((nfeat, hpad)),                               # W1 (lane-padded)
            full((1, hpad)),                                   # b1 (f32, padded)
        ],
        out_specs=pl.BlockSpec((tm, hpad), lambda i, k: (i, 0)),
        scratch_shapes=[pltpu.VMEM((tm, nfeat), jnp.float32)],
        compiler_params=_compiler_params(est1),
    )(adj_c, x_c, x_c, w1_p, b1_p)

    # ---- Phase 2: out = log_softmax(((adj @ h) + 0.2*h) @ W2p + b2p) ----
    est2 = (2 * (tm * tk + tk * hpad + tm * hpad) * isz
            + 2 * (hpad * cpad * isz + 2 * cpad * 4)
            + 2 * tm * cpad * 4
            + tm * hpad * 4)
    out_p = pl.pallas_call(
        _gcn_layer2_kernel,
        out_shape=jax.ShapeDtypeStruct((n, cpad), jnp.float32),
        grid=grid,
        in_specs=[
            pl.BlockSpec((tm, tk), lambda i, k: (i, k)),       # adj (streamed)
            pl.BlockSpec((tk, hpad), lambda i, k: (k, 0)),     # h, contraction tile
            pl.BlockSpec((tm, hpad), lambda i, k: (i, 0)),     # h, residual row tile
            full((hpad, cpad)),                                # W2 (lane-padded)
            full((1, cpad)),                                   # b2 (f32, padded)
            full((1, cpad)),                                   # log_softmax lane mask
        ],
        out_specs=pl.BlockSpec((tm, cpad), lambda i, k: (i, 0)),
        scratch_shapes=[pltpu.VMEM((tm, hpad), jnp.float32)],
        compiler_params=_compiler_params(est2),
    )(adj_c, h, h, w2_p, b2_p, mask_p)

    return out_p[:, :nclass]


# ---------------------------------------------------------------------------
# Parameter init / reference
# ---------------------------------------------------------------------------
def init_gcn_params(key, nfeat, nhid, nclass):
    """Deterministic re-implementation of GraphConvolution.reset_parameters:
    uniform(-stdv, stdv) with stdv = 1/sqrt(out_features)."""
    k1, k2, k3, k4 = jax.random.split(key, 4)

    stdv1 = 1.0 / math.sqrt(nhid)
    w1 = jax.random.uniform(k1, (nfeat, nhid), jnp.float32, -stdv1, stdv1)
    b1 = jax.random.uniform(k2, (1, nhid), jnp.float32, -stdv1, stdv1)

    stdv2 = 1.0 / math.sqrt(nclass)
    w2 = jax.random.uniform(k3, (nhid, nclass), jnp.float32, -stdv2, stdv2)
    b2 = jax.random.uniform(k4, (1, nclass), jnp.float32, -stdv2, stdv2)

    return w1, b1, w2, b2


def _reference_forward(x, adj, w1, b1, w2, b2):
    """Plain-JAX f32 reference (un-folded, un-reassociated) for a sanity check."""
    s1 = x @ w1
    h = adj @ s1 + b1 + 0.2 * s1
    h = jnp.maximum(h, 0.0)
    s2 = h @ w2
    out = adj @ s2 + b2 + 0.2 * s2
    return jax.nn.log_softmax(out, axis=1)


if __name__ == "__main__":
    NFEAT, NHID, NCLASS = 32, 64, 16

    def build_inputs(key, n):
        k_x, k_adj, k_p = jax.random.split(key, 3)
        x = jax.random.normal(k_x, (n, NFEAT), jnp.float32)
        # Symmetric, row-normalized dense adjacency (dense equivalent of torch.sparse.mm input).
        a = (jax.random.uniform(k_adj, (n, n)) < 0.05).astype(jnp.float32)
        a = jnp.maximum(a, a.T) + jnp.eye(n, dtype=jnp.float32)
        adj = a / jnp.sum(a, axis=1, keepdims=True)
        params = init_gcn_params(k_p, NFEAT, NHID, NCLASS)
        return x, adj, params

    key = jax.random.PRNGKey(0)

    # N=128 -> tm=64, grid=(2,1); N=512 -> tm=256, grid=(2,1): exercises row tiling
    # and the pl.when(k==0)/pl.when(k==last) accumulator phases.
    for n in (128, 512):
        x, adj, (w1, b1, w2, b2) = build_inputs(jax.random.fold_in(key, n), n)
        out = jax.block_until_ready(gcn_forward(x, adj, w1, b1, w2, b2))
        ref = _reference_forward(x, adj, w1, b1, w2, b2)
        assert out.shape == (n, NCLASS)
        # bf16 matmul operands with f32 accumulation -> loosened tolerance vs f32 reference.
        assert jnp.allclose(out, ref, atol=5e-2, rtol=1e-2), f"mismatch vs reference at N={n}"

    print("KERNEL_OK")
</pallas_src>

<mosaic_0001>
module attributes {stable_mosaic.version = 11 : i64} {
  func.func @_gcn_layer1_kernel(%arg0: i32, %arg1: i32, %arg2: memref<64x128xbf16, #tpu.memory_space<vmem>>, %arg3: memref<128x32xbf16, #tpu.memory_space<vmem>>, %arg4: memref<64x32xbf16, #tpu.memory_space<vmem>>, %arg5: memref<32x128xbf16, #tpu.memory_space<vmem>>, %arg6: memref<1x128xf32, #tpu.memory_space<vmem>>, %arg7: memref<64x128xbf16, #tpu.memory_space<vmem>>, %arg8: memref<64x32xf32, #tpu.memory_space<vmem>>) attributes {dimension_semantics = [#tpu.dimension_semantics<parallel>, #tpu.dimension_semantics<arbitrary>], iteration_bounds = array<i64: 2, 1>, scalar_prefetch = 0 : i64, scratch_operands = 1 : i64, tpu.core_type = #tpu.core_type<tc>, window_params = [{transform_indices = @transform_0, window_bounds = array<i64: 64, 128>}, {transform_indices = @transform_1, window_bounds = array<i64: 128, 32>}, {transform_indices = @transform_2, window_bounds = array<i64: 64, 32>}, {pipeline_mode = #tpu.pipeline_mode<synchronous>, transform_indices = @transform_3, window_bounds = array<i64: 32, 128>}, {pipeline_mode = #tpu.pipeline_mode<synchronous>, transform_indices = @transform_4, window_bounds = array<i64: 1, 128>}, {transform_indices = @transform_5, window_bounds = array<i64: 64, 128>}]} {
    %c0_i32 = arith.constant 0 : i32
    %0 = arith.cmpi eq, %arg1, %c0_i32 : i32
    %1 = arith.extui %0 : i1 to i32
    %c0_i32_0 = arith.constant 0 : i32
    %2 = arith.cmpi ne, %1, %c0_i32_0 : i32
    scf.if %2 {
      %c0_10 = arith.constant 0 : index
      %c0_11 = arith.constant 0 : index
      %12 = vector.load %arg4[%c0_10, %c0_11] : memref<64x32xbf16, #tpu.memory_space<vmem>>, vector<64x32xbf16>
      %13 = arith.extf %12 : vector<64x32xbf16> to vector<64x32xf32>
      %cst_12 = arith.constant 2.000000e-01 : f32
      %14 = vector.broadcast %cst_12 : f32 to vector<64x32xf32>
      %15 = arith.mulf %14, %13 : vector<64x32xf32>
      %c0_13 = arith.constant 0 : index
      %c0_14 = arith.constant 0 : index
      %16 = vector.load %arg8[%c0_13, %c0_14] : memref<64x32xf32, #tpu.memory_space<vmem>>, vector<64x32xf32>
      tpu.vector_store %arg8[%c0_13, %c0_14], %15 {strides = array<i32>} : memref<64x32xf32, #tpu.memory_space<vmem>>, vector<64x32xf32>,
    } else {
    }
    %c0 = arith.constant 0 : index
    %c0_1 = arith.constant 0 : index
    %3 = vector.load %arg8[%c0, %c0_1] : memref<64x32xf32, #tpu.memory_space<vmem>>, vector<64x32xf32>
    %c0_2 = arith.constant 0 : index
    %c0_3 = arith.constant 0 : index
    %4 = vector.load %arg2[%c0_2, %c0_3] : memref<64x128xbf16, #tpu.memory_space<vmem>>, vector<64x128xbf16>
    %c0_4 = arith.constant 0 : index
    %c0_5 = arith.constant 0 : index
    %5 = vector.load %arg3[%c0_4, %c0_5] : memref<128x32xbf16, #tpu.memory_space<vmem>>, vector<128x32xbf16>
    %cst = arith.constant dense<0.000000e+00> : vector<64x32xf32>
    %6 = tpu.matmul %4, %5, %cst {dimension_numbers = #tpu.dot_dimension_numbers<[1], [0], [0], [1], [0, 0, 1, 1], [], []>} : vector<64x128xbf16>, vector<128x32xbf16>, vector<64x32xf32> -> vector<64x32xf32>
    %7 = arith.addf %3, %6 : vector<64x32xf32>
    %c0_6 = arith.constant 0 : index
    %c0_7 = arith.constant 0 : index
    %8 = vector.load %arg8[%c0_6, %c0_7] : memref<64x32xf32, #tpu.memory_space<vmem>>, vector<64x32xf32>
    tpu.vector_store %arg8[%c0_6, %c0_7], %7 {strides = array<i32>} : memref<64x32xf32, #tpu.memory_space<vmem>>, vector<64x32xf32>,
    %c0_i32_8 = arith.constant 0 : i32
    %9 = arith.cmpi eq, %arg1, %c0_i32_8 : i32
    %10 = arith.extui %9 : i1 to i32
    %c0_i32_9 = arith.constant 0 : i32
    %11 = arith.cmpi ne, %10, %c0_i32_9 : i32
    scf.if %11 {
      %c0_10 = arith.constant 0 : index
      %c0_11 = arith.constant 0 : index
      %12 = vector.load %arg8[%c0_10, %c0_11] : memref<64x32xf32, #tpu.memory_space<vmem>>, vector<64x32xf32>
      %13 = arith.truncf %12 : vector<64x32xf32> to vector<64x32xbf16>
      %c0_12 = arith.constant 0 : index
      %c0_13 = arith.constant 0 : index
      %14 = vector.load %arg5[%c0_12, %c0_13] : memref<32x128xbf16, #tpu.memory_space<vmem>>, vector<32x128xbf16>
      %cst_14 = arith.constant dense<0.000000e+00> : vector<64x128xf32>
      %15 = tpu.matmul %13, %14, %cst_14 {dimension_numbers = #tpu.dot_dimension_numbers<[1], [0], [0], [1], [0, 0, 1, 1], [], []>} : vector<64x32xbf16>, vector<32x128xbf16>, vector<64x128xf32> -> vector<64x128xf32>
      %c0_15 = arith.constant 0 : index
      %c0_16 = arith.constant 0 : index
      %16 = vector.load %arg6[%c0_15, %c0_16] : memref<1x128xf32, #tpu.memory_space<vmem>>, vector<1x128xf32>
      %17 = vector.broadcast %16 : vector<1x128xf32> to vector<64x128xf32>
      %18 = arith.addf %15, %17 : vector<64x128xf32>
      %cst_17 = arith.constant 0.000000e+00 : f32
      %19 = vector.broadcast %cst_17 : f32 to vector<64x128xf32>
      %20 = arith.maximumf %18, %19 : vector<64x128xf32>
      %21 = arith.truncf %20 : vector<64x128xf32> to vector<64x128xbf16>
      %c0_18 = arith.constant 0 : index
      %c0_19 = arith.constant 0 : index
      %22 = vector.load %arg7[%c0_18, %c0_19] : memref<64x128xbf16, #tpu.memory_space<vmem>>, vector<64x128xbf16>
      tpu.vector_store %arg7[%c0_18, %c0_19], %21 {strides = array<i32>} : memref<64x128xbf16, #tpu.memory_space<vmem>>, vector<64x128xbf16>,
    } else {
    }
    return
  }
  func.func @transform_0(%arg0: i32, %arg1: i32) -> (i32, i32) {
    %c0_i32 = arith.constant 0 : i32
    return %arg0, %arg1 : i32, i32
  }
  func.func @transform_1(%arg0: i32, %arg1: i32) -> (i32, i32) {
    %c0_i32 = arith.constant 0 : i32
    %c0_i32_0 = arith.constant 0 : i32
    return %arg1, %c0_i32 : i32, i32
  }
  func.func @transform_2(%arg0: i32, %arg1: i32) -> (i32, i32) {
    %c0_i32 = arith.constant 0 : i32
    %c0_i32_0 = arith.constant 0 : i32
    return %arg0, %c0_i32 : i32, i32
  }
  func.func @transform_3(%arg0: i32, %arg1: i32) -> (i32, i32) {
    %c0_i32 = arith.constant 0 : i32
    %c0_i32_0 = arith.constant 0 : i32
    %c0_i32_1 = arith.constant 0 : i32
    return %c0_i32, %c0_i32_0 : i32, i32
  }
  func.func @transform_4(%arg0: i32, %arg1: i32) -> (i32, i32) {
    %c0_i32 = arith.constant 0 : i32
    %c0_i32_0 = arith.constant 0 : i32
    %c0_i32_1 = arith.constant 0 : i32
    return %c0_i32, %c0_i32_0 : i32, i32
  }
  func.func @transform_5(%arg0: i32, %arg1: i32) -> (i32, i32) {
    %c0_i32 = arith.constant 0 : i32
    %c0_i32_0 = arith.constant 0 : i32
    return %arg0, %c0_i32 : i32, i32
  }
}

</mosaic_0001>

<bundles_post_ra>
// kernel: tpu_custom_call.1
= control target key start
LH: loop header
LB: loop body
LE: loop exit
PB: predicated region body
PF: predicated region fallthrough
CT: control target
= control target key end

     0   :  { %10 = vsyncpa [#allocation4], 0  ;;  %s1309_s0 = inlined_call_operand.vmem [shape: bf16[128,128], index: 0, kind: input, shape index: {}]   ;;  %s1310_s1 = inlined_call_operand.vmem [shape: bf16[128,32], index: 1, kind: input, shape index: {}]   ;;  %s1311_s2 = inlined_call_operand.vmem [shape: bf16[128,32], index: 2, kind: input, shape index: {}]   ;;  %s1312_s3 = inlined_call_operand.vmem [shape: bf16[32,128], index: 3, kind: input, shape index: {}]   ;;  %s1313_s4 = inlined_call_operand.vmem [shape: f32[1,128], index: 4, kind: input, shape index: {}]   ;;  %s1314_s5 = inlined_call_operand.hbm [shape: bf16[128,128], index: 5, kind: output, shape index: {}]  }
   0x1   :  { %12 = vsyncpa [#allocation4 + $0x1], 0  ;;  %s1124_s18 = smov 0   ;;  %s1126_s19 = smov 0  }
   0x2   :  { %s1128_s20 = smov 0   ;;  %s1130_s21 = smov 0  }
   0x3   :  { %s1132_s22 = smov 0   ;;  %s1134_s23 = smov 0  }
   0x4 LB: > { %s794_s24 = sadd.s32 4294967295, %s1089_s23   ;;  %s795_s25 = sadd.s32 4294967294, %s1089_s23   ;;  %s1089_s23 = sphi %s1134_s23, %s18_s23   ;;  %s1085_s22 = sphi %s1132_s22, %s1321_s22   ;;  %s1081_s21 = sphi %s1130_s21, %s1320_s21   ;;  %s1077_s20 = sphi %s1128_s20, %s1319_s20   ;;  %s1073_s19 = sphi %s1126_s19, %s1318_s19   ;;  %s1069_s18 = sphi %s1124_s18, %s1317_s18  }
   0x5   : > { %s30_s26 = sadd.s32 1, %s1085_s22  ;;  %s159_s27 = sadd.s32 1, %s1077_s20 }
   0x6   : > { %p32_p0 = scmp.ge.s32.totalorder %s30_s26, 2  ;;  %p169_p1 = scmp.ne.s32.totalorder %s1077_s20, %s1073_s19 }
   0x7   : > { %p170_p2 = scmp.eq.s32.totalorder %s794_s24, 1  ;;  %p175_p3 = scmp.ne.s32.totalorder %s1073_s19, %s1069_s18 }
   0x8   : > { %s1323_s26 = smov (%p32_p0, %s30_s26), 0  ;;  %p176_p5 = scmp.eq.s32.totalorder %s795_s25, 1 }
   0x9   : > { %p1164_p4 = por %p170_p2, %p169_p1  ;;  %s156_s29 = ssub.s32 %s1085_s22, %s1323_s26 }
   0xa   : > { %p799_p6 = scmp.ge.s32.totalorder %s1089_s23, 1  ;;  %p157_p7 = scmp.eq.s32.totalorder %s156_s29, 0 }
   0xb   : > { %p1171_p8 = por %p176_p5, %p175_p3  ;;  %p230_p9 = scmp.lt.s32.totalorder %s1089_s23, 3 }
   0xc   : > { %s1177_s6 = scalar_select %p157_p7, %s1077_s20, %s159_s27  }
   0xd   : > { %p231_p10 = pnand %p799_p6, %p230_p9 }
   0xe   : > { %s801_s9 = sshll.u32 (!%p231_p10), %s1081_s21, 3  ;;  %s845_s11 = sshll.u32 (!%p231_p10), %s1081_s21, 9 }
   0xf   : > { %234 = sbr.rel (%p231_p10) target bundleno = 492 (0x1ec), region = 40  ;;  %p272_p11 = scmp.lt.s32.totalorder (!%p231_p10), %s801_s9, 15 }
  0x10   : > { %s1091_s16 = smov (!%p231_p10), [#allocation3]  }
  0x14   : > { %v999_v0 = vld [vmem:[%s1310_s1 + $0x38] sm:$0xff]   ;;  %v1000_v1 = vld [vmem:[%s1310_s1 + $0x30] sm:$0xff]   ;;  %s1325_s9 = smov (!%p272_p11, %s801_s9), 15  ;;  %v1001_v2 = vld [vmem:[%s1310_s1 + $0x28] sm:$0xff]   ;;  %vm322_vm0 = vcmask 261120  }
  0x15   : > { %906 = vmatprep.subr.bf16.mxu0 %v999_v0  ;;  %s802_s14 = sshll.u32 %s1325_s9, 2  ;;  %v1002_v3 = vld [vmem:[%s1310_s1 + $0x20] sm:$0xff]   ;;  %v1003_v5 = vld [vmem:[%s1310_s1 + $0x18] sm:$0xff]   ;;  %v1004_v9 = vld [vmem:[%s1310_s1 + $0x10] sm:$0xff]  }
  0x16   : > { %907 = vmatpush3.bf16.msra.mxu0 %v999_v0  ;;  %s1192_s17 = scalar_lea.vmem %s1309_s0, %s802_s14  ;;  %s1201_s7 = scalar_lea.vmem %s1311_s2, %s802_s14  ;;  %v1005_v10 = vld [vmem:[%s1310_s1 + $0x8] sm:$0xff]   ;;  %v1006_v11 = vld [vmem:[%s1310_s1] sm:$0xff]  }
  0x17   : > { %908 = vmatprep.subr.bf16.mxu0 %v1000_v1  ;;  %v1007_v4 = vld [vmem:[%s1192_s17] sm:$0xff]   ;;  %v882_v6 = vld [vmem:[%s1201_s7 + $0x8] sm:$0xff]   ;;  %v1009_v13 = vld [vmem:[%s1192_s17 + $0x10] sm:$0xff]   ;;  %s1260_s14 = scalar_lea.hbm %s1314_s5, %s845_s11 }
  0x18   : > { %922 = vmatprep.mubr.bf16.mxu0 %v1007_v4  ;;  %v852_v7 = vunpack.c.l.bf16 %v882_v6  ;;  %v1008_v12 = vld [vmem:[%s1192_s17 + $0x8] sm:$0xff]   ;;  %v1010_v14 = vld [vmem:[%s1192_s17 + $0x18] sm:$0xff]   ;;  %v847_v15 = vld [vmem:[%s1201_s7] sm:$0xff]   ;;  %v853_v18 = vunpack.c.h.bf16 %v882_v6  ;;  %s1017_s17 = sshll.u32 %s1091_s16, 4  ;;  %s1018_s17 = int_to_ptr.vmem [resolvable:$false] %s1017_s17 }
  0x19   : > { %v848_v16 = vunpack.c.l.bf16 %v847_v15  ;;  %v849_v20 = vunpack.c.h.bf16 %v847_v15  ;;  %v884_v21 = vld [vmem:[%s1201_s7 + $0x18] sm:$0xff]   ;;  %v883_v24 = vld [vmem:[%s1201_s7 + $0x10] sm:$0xff]   ;;  %v1011_v32 = vld [vmem:[%s1312_s3 + $0x8] sm:$0xff]   ;;  %s268_s7 = sand.u32 1, %s1073_s19   ;;  %s1019_s24 = scalar_lea.vmem %s1018_s17, 1024 }
  0x1a   : > { %909 = vmatpush3.bf16.msra.mxu0 %v1000_v1  ;;  %v316_v8 = vmul.f32 0.2, %v852_v7  ;;  %v317_v19 = vmul.f32 0.2, %v853_v18  ;;  %v860_v23 = vunpack.c.l.bf16 %v884_v21  ;;  %v856_v26 = vunpack.c.l.bf16 %v883_v24  ;;  %930 = vmatprep.subr.bf16.mxu1 %v1011_v32  ;;  %v1012_v33 = vld [vmem:[%s1312_s3] sm:$0xff]   ;;  %s800_s8 = sshll.u32 %s268_s7, 5 }
  0x1b   : > { %910 = vmatprep.subr.bf16.mxu0 %v1001_v2  ;;  %v314_v17 = vmul.f32 0.2, %v848_v16  ;;  %v315_v22 = vmul.f32 0.2, %v849_v20  ;;  %v861_v28 = vunpack.c.h.bf16 %v884_v21  ;;  %v857_v30 = vunpack.c.h.bf16 %v883_v24  ;;  %931 = vmatpush3.bf16.msra.mxu1 %v1011_v32  ;;  %v817_v7 = vld [vmem:[%s1313_s4] ss:$0 sm:$0xff] }
  0x1c   : > { %325 = vst.msk [vmem:[#allocation2 + $0x10] sm:$0xff] %vm322_vm0, %v316_v8  ;;  %326 = vst.msk [vmem:[#allocation2 + $0x18] sm:$0xff] %vm322_vm0, %v317_v19  ;;  %v320_v25 = vmul.f32 0.2, %v860_v23  ;;  %v318_v27 = vmul.f32 0.2, %v856_v26  ;;  %932 = vmatprep.subr.bf16.mxu1 %v1012_v33 }
  0x1d   : > { %323 = vst.msk [vmem:[#allocation2] sm:$0xff] %vm322_vm0, %v314_v17  ;;  %324 = vst.msk [vmem:[#allocation2 + $0x8] sm:$0xff] %vm322_vm0, %v315_v22  ;;  %v321_v29 = vmul.f32 0.2, %v861_v28  ;;  %v319_v31 = vmul.f32 0.2, %v857_v30 }
  0x1e   : > { %911 = vmatpush3.bf16.msra.mxu0 %v1001_v2  ;;  %329 = vst.msk [vmem:[#allocation2 + $0x30] sm:$0xff] %vm322_vm0, %v320_v25  ;;  %327 = vst.msk [vmem:[#allocation2 + $0x20] sm:$0xff] %vm322_vm0, %v318_v27  ;;  %s270_s9 = scalar_lea.vmem [#allocation3], %s800_s8  ;;  %s1264_s15 = scalar_lea.sflag [#allocation4], %s268_s7 }
  0x1f   : > { %912 = vmatprep.subr.bf16.mxu0 %v1002_v3  ;;  %330 = vst.msk [vmem:[#allocation2 + $0x38] sm:$0xff] %vm322_vm0, %v321_v29  ;;  %328 = vst.msk [vmem:[#allocation2 + $0x28] sm:$0xff] %vm322_vm0, %v319_v31  ;;  %933 = vmatpush3.bf16.msra.mxu1 %v1012_v33  ;;  %s694_s10 = sshll.u32 %s270_s9, 4  ;;  %s1255_s10 = int_to_ptr.vmem [resolvable:$true] %s694_s10 }
  0x20   : > { %s1013_s21 = scalar_lea.vmem %s1255_s10, 512  ;;  %p1020_p1 = scmp.lt.s32.totalorder %s1255_s10, %s1018_s17 }
  0x21   : > { %p1014_p12 = scmp.ne.s32.totalorder %s1255_s10, %s1013_s21  ;;  %p1021_p2 = scmp.lt.s32.totalorder %s1019_s24, %s1013_s21 }
  0x22   : > { %913 = vmatpush3.bf16.msra.mxu0 %v1002_v3 }
  0x23   : > { %914 = vmatprep.subr.bf16.mxu0 %v1003_v5  ;;  %v333_v34 = vld [vmem:[#allocation2 + $0x10] sm:$0xff]  ;;  %v334_v39 = vld [vmem:[#allocation2 + $0x18] sm:$0xff]  ;;  %p1015_p13 = pnand %p1014_p12, %p1164_p4  ;;  %p1022_p3 = por %p1021_p2, %p1020_p1 }
  0x24   : > { %v331_v36 = vld [vmem:[#allocation2] sm:$0xff]  ;;  %v332_v42 = vld [vmem:[#allocation2 + $0x8] sm:$0xff] }
  0x25   : > { %v337_v45 = vld [vmem:[#allocation2 + $0x30] sm:$0xff]  ;;  %v335_v48 = vld [vmem:[#allocation2 + $0x20] sm:$0xff]  ;;  %p1016_p0 = pneg %p1015_p13 }
  0x26   : > { %915 = vmatpush3.bf16.msra.mxu0 %v1003_v5  ;;  %v338_v51 = vld [vmem:[#allocation2 + $0x38] sm:$0xff]  ;;  %v336_v54 = vld [vmem:[#allocation2 + $0x28] sm:$0xff] }
  0x27   : > { %916 = vmatprep.subr.bf16.mxu0 %v1004_v9  ;;  %p1023_p5 = pnand %p1022_p3, %p1016_p0 }
  0x2a   : > { %917 = vmatpush3.bf16.msra.mxu0 %v1004_v9 }
  0x2b   : > { %918 = vmatprep.subr.bf16.mxu0 %v1005_v10 }
  0x2e   : > { %919 = vmatpush3.bf16.msra.mxu0 %v1005_v10 }
  0x2f   : > { %920 = vmatprep.subr.bf16.mxu0 %v1006_v11 }
  0x32   : > { %921 = vmatpush3.bf16.msra.mxu0 %v1006_v11 }
  0x35   : > { %923 = vmatmul.mubr.bf16.vlgmr.msra.gmra.mxu0 %v1008_v12 }
  0x36   : > { %926 = vmatprep.mubr.bf16.mxu0 %v1009_v13 }
  0x3d   : > { %927 = vmatmul.mubr.bf16.gmra.mxu0 %v1010_v14 }
  0xf5   : > { %v924_v35 = vpop.f32.mrf.mxu0 }
  0xf6   : > { %v502_v37 = vadd.f32 %v924_v35, %v333_v34 }
  0xf7   : > { %v469_v38 = vpop.f32.mrf.mxu0 }
  0xf8   : > { %511 = vst.msk [vmem:[#allocation2 + $0x10] sm:$0xff] %vm322_vm0, %v502_v37  ;;  %v500_v40 = vadd.f32 %v469_v38, %v331_v36 }
  0xf9   : > { %v925_v41 = vpop.f32.mrf.mxu0 }
  0xfa   : > { %509 = vst.msk [vmem:[#allocation2] sm:$0xff] %vm322_vm0, %v500_v40  ;;  %v503_v43 = vadd.f32 %v925_v41, %v334_v39 }
  0xfb   : > { %v472_v44 = vpop.f32.mrf.mxu0 }
  0xfc   : > { %512 = vst.msk [vmem:[#allocation2 + $0x18] sm:$0xff] %vm322_vm0, %v503_v43  ;;  %v501_v46 = vadd.f32 %v472_v44, %v332_v42 }
  0xfd   : > { %v928_v47 = vpop.f32.mrf.mxu0 }
  0xfe   : > { %510 = vst.msk [vmem:[#allocation2 + $0x8] sm:$0xff] %vm322_vm0, %v501_v46  ;;  %v506_v49 = vadd.f32 %v928_v47, %v337_v45 }
  0xff   : > { %v485_v50 = vpop.f32.mrf.mxu0  ;;  %v522_v62 = vld [vmem:[#allocation2 + $0x10] sm:$0xff] }
 0x100   : > { %515 = vst.msk [vmem:[#allocation2 + $0x30] sm:$0xff] %vm322_vm0, %v506_v49  ;;  %v504_v52 = vadd.f32 %v485_v50, %v335_v48 }
 0x101   : > { %v929_v53 = vpop.f32.mrf.mxu0  ;;  %v520_v59 = vld [vmem:[#allocation2] sm:$0xff] }
 0x102   : > { %513 = vst.msk [vmem:[#allocation2 + $0x20] sm:$0xff] %vm322_vm0, %v504_v52  ;;  %v507_v55 = vadd.f32 %v929_v53, %v338_v51 }
 0x103   : > { %v488_v56 = vpop.f32.mrf.mxu0  ;;  %v523_v58 = vld [vmem:[#allocation2 + $0x18] sm:$0xff] }
 0x104   : > { %516 = vst.msk [vmem:[#allocation2 + $0x38] sm:$0xff] %vm322_vm0, %v507_v55  ;;  %v505_v57 = vadd.f32 %v488_v56, %v336_v54  ;;  %v529_v63 = vpack.c.bf16 %v523_v58, %v522_v62 }
 0x105   : > { %v521_v60 = vld [vmem:[#allocation2 + $0x8] sm:$0xff] }
 0x106   : > { %514 = vst.msk [vmem:[#allocation2 + $0x28] sm:$0xff] %vm322_vm0, %v505_v57  ;;  %v528_v61 = vpack.c.bf16 %v521_v60, %v520_v59 }
 0x107   : > { %v526_v4 = vld [vmem:[#allocation2 + $0x30] sm:$0xff] }
 0x108   : > { %934 = vmatprep.mubr.msk.bf16.mxu1 %vm322_vm0, %v528_v61 }
 0x109   : > { %935 = vmatmul.mubr.msk.bf16.vlgmr.msra.gmra.mxu1 %vm322_vm0, %v529_v63  ;;  %v524_v1 = vld [vmem:[#allocation2 + $0x20] sm:$0xff] }
 0x10b   : > { %v527_v0 = vld [vmem:[#allocation2 + $0x38] sm:$0xff] }
 0x10c   : > { %v531_v5 = vpack.c.bf16 %v527_v0, %v526_v4 }
 0x10d   : > { %v525_v2 = vld [vmem:[#allocation2 + $0x28] sm:$0xff] }
 0x10e   : > { %v530_v3 = vpack.c.bf16 %v525_v2, %v524_v1 }
 0x110   : > { %938 = vmatprep.mubr.msk.bf16.mxu1 %vm322_vm0, %v530_v3 }
 0x111   : > { %939 = vmatmul.mubr.msk.bf16.gmra.mxu1 %vm322_vm0, %v531_v5 }
 0x1c9   : > { %v936_v6 = vpop.f32.mrf.mxu1 }
 0x1ca   : > { %v610_v9 = vadd.f32 %v936_v6, %v817_v7 }
 0x1cb   : > { %v601_v8 = vpop.f32.mrf.mxu1 }
 0x1cc   : > { %v602_v11 = vadd.f32 %v817_v7, %v601_v8  ;;  %v634_v14 = vmax.f32 %v610_v9, 0.0 }
 0x1cd   : > { %v937_v10 = vpop.f32.mrf.mxu1 }
 0x1ce   : > { %v613_v12 = vadd.f32 %v937_v10, %v817_v7  ;;  %v632_v18 = vmax.f32 %v602_v11, 0.0 }
 0x1cf   : > { %v604_v13 = vpop.f32.mrf.mxu1 }
 0x1d0   : > { %v635_v15 = vmax.f32 %v613_v12, 0.0  ;;  %v605_v16 = vadd.f32 %v817_v7, %v604_v13 }
 0x1d1   : > { %v940_v17 = vpop.f32.mrf.mxu1 }
 0x1d2   : > { %v870_v19 = vpack.c.bf16 %v635_v15, %v634_v14  ;;  %v633_v20 = vmax.f32 %v605_v16, 0.0  ;;  %v626_v23 = vadd.f32 %v940_v17, %v817_v7 }
 0x1d3   : > { %v617_v21 = vpop.f32.mrf.mxu1 }
 0x1d4   : > { %885 = vst [vmem:[%s270_s9 + $0x8] sm:$0xff] %v870_v19   ;;  %v865_v22 = vpack.c.bf16 %v633_v20, %v632_v18  ;;  %v618_v25 = vadd.f32 %v817_v7, %v617_v21  ;;  %v638_v28 = vmax.f32 %v626_v23, 0.0 }
 0x1d5   : > { %v941_v24 = vpop.f32.mrf.mxu1 }
 0x1d6   : > { %866 = vst [vmem:[%s270_s9] sm:$0xff] %v865_v22   ;;  %v629_v26 = vadd.f32 %v941_v24, %v817_v7  ;;  %v636_v31 = vmax.f32 %v618_v25, 0.0 }
 0x1d7   : > { %v620_v27 = vpop.f32.mrf.mxu1 }
 0x1d8   : > { %v639_v29 = vmax.f32 %v629_v26, 0.0  ;;  %v621_v30 = vadd.f32 %v817_v7, %v620_v27 }
 0x1da   : > { %v880_v32 = vpack.c.bf16 %v639_v29, %v638_v28  ;;  %v637_v33 = vmax.f32 %v621_v30, 0.0 }
 0x1dc   : > { %887 = vst [vmem:[%s270_s9 + $0x18] sm:$0xff] %v880_v32   ;;  %v875_v34 = vpack.c.bf16 %v637_v33, %v636_v31 }
 0x1de   : > { %886 = vst [vmem:[%s270_s9 + $0x10] sm:$0xff] %v875_v34  }
 0x1df   : > { %1026 = shalt.err (!%p1023_p5)
}
 0x1e0   : > { %s1027_s25 = scalar_lea.hbm %s1260_s14, 512  ;;  %s1031_s7 = scalar_lea.hbm %s1314_s5, 1024 }
 0x1e1   : > { %p1028_p6 = scmp.ne.s32.totalorder %s1260_s14, %s1027_s25  ;;  %p1032_p10 = scmp.lt.s32.totalorder %s1260_s14, %s1314_s5 }
 0x1e2   : > { %p1033_p11 = scmp.lt.s32.totalorder %s1031_s7, %s1027_s25 }
 0x1e3   : > { %p1029_p7 = pnand %p1028_p6, %p1164_p4 }
 0x1e4   : > { %p1034_p12 = por %p1033_p11, %p1032_p10 }
 0x1e5   : > { %p1030_p9 = pneg %p1029_p7 }
 0x1e7   : > { %p1035_p13 = pnand %p1034_p12, %p1030_p9 }
 0x1e9   : > { %1038 = shalt.err (!%p1035_p13)
}
 0x1ea   : > { %s1092_s11 = smov 64   ;;  %s1093_s12 = smov 4  }
 0x1eb   : > { %942 = dma.vmem_to_hbm [thread:$0]  (%p1164_p4), %s1255_s10, 512, %s1260_s14, %s1264_s15, %s1092_s11, %s1092_s11, %s1093_s12  }
 0x1ec PF: > { %p948_p0 = scmp.ge.s32.totalorder %s1089_s23, 2  ;;  %s709_s13 = sand.u32 1, %s1069_s18  }
 0x1ed   : > { %s710_s21 = scalar_lea.sflag [#allocation4], %s709_s13 }
 0x1ee   : > { %p945_p1 = pnand %p948_p0, %p1171_p8 }
 0x1f0   : > { %p946_p2 = pneg %p945_p1 }
 0x1f2   : > { %1064 = dma.done.wait (%p946_p2), %s710_s21, 512  }
 0x1f3   : > { %1066 = vsyncadd (%p946_p2), %s710_s21, 4294966784  ;;  %s18_s23 = sadd.s32 1, %s1089_s23   ;;  %s1317_s18 = smov %s1073_s19 }
 0x1f4   : > { %p15_p3 = scmp.ge.s32.totalorder %s18_s23, 4   ;;  %s1318_s19 = smov %s1077_s20 }
 0x1f5   : > { %s1319_s20 = smov %s1177_s6  ;;  %s1320_s21 = smov %s1085_s22 }
 0x1f6   : > { %s1321_s22 = smov %s1323_s26  ;;  %17 = sbr.rel (!%p15_p3) target bundleno = 4 (0x4), region = 89 }
 0x1fb   :  { %715 = vsyncpa [#allocation4], 1 }
 0x1fc   :  { %717 = vsyncpa [#allocation4 + $0x1], 1 }

</bundles_post_ra>
